<compile_context>
chip_gen: v6e
topology: v6e:2x2x1
jax: 0.10.0
libtpu: 0.0.40
codegen_flags: <defaults>
</compile_context>

<pallas_src>
import functools

import jax
import jax.numpy as jnp
from jax.experimental import pallas as pl
from jax.experimental.pallas import tpu as pltpu

LANES = 128
# Big blocks amortize the ~0.35 us/step grid overhead against per-step DMA.
# 4096 rows x 128 lanes x f32 x 3 inputs x 2 buffers = 12 MiB of VMEM input
# buffers, covered by the explicit vmem_limit_bytes below (safe on v5e/v6e/
# v7x).  Sweepable: v7x favors the high end (4096-8192), v5e 2048-4096.
MAX_BLOCK_ROWS = 4096


# --------------------------------------------------------------------------
# Non-smooth path: masked L1 + MSE partial reduction (HBM-bandwidth bound)
# --------------------------------------------------------------------------
def _masked_loss_kernel(x_ref, y_ref, m_ref, abs_ref, sq_ref, *,
                        last_block_rows):
    """One grid step of the masked L1 + MSE partial reduction.

    last_block_rows: number of valid rows in the final (overhanging) block,
    or None if every block is full (static Python value).
    """
    x = x_ref[...].astype(jnp.float32)
    y = y_ref[...].astype(jnp.float32)
    m = m_ref[...].astype(jnp.float32)   # mask streamed in native dtype

    diff = x - y
    d1 = diff * m            # == x*m - y*m
    d2 = diff - d1           # == x*(1-m) - y*(1-m)  (exact for 0/1 masks)
    a = jnp.abs(d1)
    s = d2 * d2

    def _write(av, sv):
        # Lane-dense per-block partials; cross-lane reduce finishes in JAX.
        abs_ref[0] = jnp.sum(av, axis=0, keepdims=True)
        sq_ref[0] = jnp.sum(sv, axis=0, keepdims=True)

    if last_block_rows is None:
        _write(a, s)                       # fast path: no masking emitted
    else:
        i = pl.program_id(0)
        last = pl.num_programs(0) - 1

        @pl.when(i != last)
        def _():
            _write(a, s)                   # unmasked fast path

        @pl.when(i == last)
        def _():
            # Only the final block can overhang the array; mask its garbage
            # rows (their contents are unspecified).
            row = jax.lax.broadcasted_iota(jnp.int32, a.shape, 0)
            valid = row < last_block_rows
            _write(jnp.where(valid, a, 0.0), jnp.where(valid, s, 0.0))


def _masked_reduction(inputs, targets, masks):
    tiles = []
    for arr in (inputs, targets, masks):
        flat = arr.reshape(-1)                       # native dtype kept
        rem = flat.shape[0] % LANES
        if rem:
            # TODO(synk): avoid this HBM copy for lane-ragged sizes via a
            # manual pl.ANY + make_async_copy path; padded zeros contribute 0
            # to both sums, so no extra in-kernel masking is required.
            flat = jnp.pad(flat, (0, LANES - rem))
        tiles.append(flat.reshape(-1, LANES))

    rows = tiles[0].shape[0]
    br = rows if rows <= MAX_BLOCK_ROWS else MAX_BLOCK_ROWS
    grid_n = -(-rows // br)
    tail = rows - (grid_n - 1) * br
    last_block_rows = None if tail == br else tail

    kernel = functools.partial(_masked_loss_kernel,
                               last_block_rows=last_block_rows)
    in_specs = [pl.BlockSpec((br, LANES), lambda i: (i, 0)) for _ in tiles]
    out_spec = pl.BlockSpec((1, 1, LANES), lambda i: (i, 0, 0))

    # Double-buffered input footprint + headroom for outputs / internals.
    in_bytes = sum(2 * br * LANES * t.dtype.itemsize for t in tiles)
    vmem_limit = int(in_bytes) + (8 << 20)

    abs_p, sq_p = pl.pallas_call(
        kernel,
        out_shape=(jax.ShapeDtypeStruct((grid_n, 1, LANES), jnp.float32),
                   jax.ShapeDtypeStruct((grid_n, 1, LANES), jnp.float32)),
        grid=(grid_n,),
        in_specs=in_specs,
        out_specs=(out_spec, out_spec),
        compiler_params=pltpu.CompilerParams(
            dimension_semantics=("parallel",),
            vmem_limit_bytes=vmem_limit),
    )(*tiles)
    return jnp.sum(abs_p), jnp.sum(sq_p)


# --------------------------------------------------------------------------
# Smooth path: fused  mask -> zero-pad -> box conv -> |.| / (.)^2 partials
#
# Conv is linear with no bias, so l1(conv(i*m), conv(t*m)) = mean|conv(d*m)|
# and mse(conv(i*(1-m)), conv(t*(1-m))) = mean(conv(d*(1-m))^2), d = i - t.
# The module's weight is the constant box filter 1/K^2, so every output
# channel equals inv_k2 * boxsum_KxK(sum_c z[c]).
# --------------------------------------------------------------------------
def _make_smooth_kernel(C, H, W, K, p):
    Hp, Wp = H + 2 * p, W + 2 * p
    inv_k2 = 1.0 / float(K * K)

    def kernel(x_ref, y_ref, m_ref, abs_ref, sq_ref, pm_ref, pn_ref):
        # TODO(synk): if the conv weights ever become trainable / non-constant,
        # replace this specialization with a general im2col + MXU contraction.
        sm = jnp.zeros((H, W), jnp.float32)
        sn = jnp.zeros((H, W), jnp.float32)
        for c in range(C):       # one channel at a time -> bounded live range
            d = (x_ref[0, c].astype(jnp.float32)
                 - y_ref[0, c].astype(jnp.float32))
            dm = d * m_ref[0, c].astype(jnp.float32)
            sm = sm + dm
            sn = sn + (d - dm)

        # Zero-padded slabs built in VMEM scratch.  Only the p-wide border
        # strips are zeroed each step (interior fully overwritten), which
        # stays correct under megacore "parallel" splitting.
        if p > 0:
            pm_ref[0:p, :] = jnp.zeros((p, Wp), jnp.float32)
            pm_ref[p + H:Hp, :] = jnp.zeros((Hp - H - p, Wp), jnp.float32)
            pm_ref[:, 0:p] = jnp.zeros((Hp, p), jnp.float32)
            pm_ref[:, p + W:Wp] = jnp.zeros((Hp, Wp - W - p), jnp.float32)
            pn_ref[0:p, :] = jnp.zeros((p, Wp), jnp.float32)
            pn_ref[p + H:Hp, :] = jnp.zeros((Hp - H - p, Wp), jnp.float32)
            pn_ref[:, 0:p] = jnp.zeros((Hp, p), jnp.float32)
            pn_ref[:, p + W:Wp] = jnp.zeros((Hp, Wp - W - p), jnp.float32)
        pm_ref[p:p + H, p:p + W] = sm
        pn_ref[p:p + H, p:p + W] = sn

        # KxK box sums via shifted-window adds on the padded slabs.
        # TODO(synk): for W << 128 this is lane-sparse; for large images fold
        # H*W (or several batch elements) onto the lane axis and add an
        # H-tile grid axis (with a p-row halo) to stay under v7x's 64 MiB.
        u = jnp.zeros((H, W), jnp.float32)
        v = jnp.zeros((H, W), jnp.float32)
        for kh in range(K):
            for kw in range(K):
                u = u + pm_ref[kh:kh + H, kw:kw + W]
                v = v + pn_ref[kh:kh + H, kw:kw + W]

        # Per-batch partials fully reduced in-kernel; written as a single
        # lane-dense (1,1,128) row (value in lane 0, rest zero) — no masked
        # (H, W) partial stores, no HBM writeback of conv maps.
        abs_part = float(C) * inv_k2 * jnp.sum(jnp.abs(u))
        sq_part = float(C) * inv_k2 * inv_k2 * jnp.sum(v * v)
        lane = jax.lax.broadcasted_iota(jnp.int32, (1, 1, LANES), 2)
        abs_ref[...] = jnp.where(lane == 0, abs_part, 0.0)
        sq_ref[...] = jnp.where(lane == 0, sq_part, 0.0)

    return kernel


def _smooth_reduction(inputs, targets, masks, kernel_size, padding):
    B, C, H, W = inputs.shape
    K, p = kernel_size, padding
    Hp, Wp = H + 2 * p, W + 2 * p

    blk = pl.BlockSpec((1, C, H, W), lambda b: (b, 0, 0, 0))
    out_blk = pl.BlockSpec((1, 1, LANES), lambda b: (b, 0, 0))

    in_bytes = sum(2 * C * H * W * a.dtype.itemsize
                   for a in (inputs, targets, masks))
    slab_bytes = 2 * Hp * Wp * 4
    vmem_limit = int(in_bytes + slab_bytes) + (8 << 20)

    abs_p, sq_p = pl.pallas_call(
        _make_smooth_kernel(C, H, W, K, p),
        out_shape=(jax.ShapeDtypeStruct((B, 1, LANES), jnp.float32),
                   jax.ShapeDtypeStruct((B, 1, LANES), jnp.float32)),
        grid=(B,),
        in_specs=[blk, blk, blk],
        out_specs=(out_blk, out_blk),
        scratch_shapes=[pltpu.VMEM((Hp, Wp), jnp.float32),
                        pltpu.VMEM((Hp, Wp), jnp.float32)],
        compiler_params=pltpu.CompilerParams(
            dimension_semantics=("parallel",),
            vmem_limit_bytes=vmem_limit),
    )(inputs, targets, masks)
    return jnp.sum(abs_p), jnp.sum(sq_p)


# --------------------------------------------------------------------------
# MseLoss module equivalent
# --------------------------------------------------------------------------
class MseLossPallas:
    def __init__(self, smooth=False, kernel_size=3, in_channels=3):
        self.smooth = smooth
        self.kernel_size = kernel_size
        self.in_channels = in_channels
        self.padding = (kernel_size - 1) // 2
        # Same deterministic constant weights as the PyTorch module __init__
        # (kept for the pure-JAX reference; the Pallas smooth path exploits
        # their box-filter structure directly).
        self.weight = (
            jnp.ones((in_channels, in_channels, kernel_size, kernel_size),
                     jnp.float32) / float(kernel_size ** 2))

    def __call__(self, inputs, targets, masks):
        # reduction='mean' over all elements; with odd kernel_size + 'same'
        # padding + C_out == C_in the conv preserves the shape, so the smooth
        # path shares the same denominator as the reference.
        n = float(inputs.size)
        if self.smooth:
            abs_sum, sq_sum = _smooth_reduction(
                inputs, targets, masks, self.kernel_size, self.padding)
        else:
            abs_sum, sq_sum = _masked_reduction(inputs, targets, masks)
        return abs_sum / n + sq_sum / n


# --------------------------------------------------------------------------
# Pure-JAX reference (verification only)
# --------------------------------------------------------------------------
def _reference_loss(inputs, targets, masks, smooth, weight, padding):
    if smooth:
        def conv(x):
            return jax.lax.conv_general_dilated(
                x, weight, window_strides=(1, 1),
                padding=[(padding, padding), (padding, padding)],
                dimension_numbers=("NCHW", "OIHW", "NCHW"))
        a, b = conv(inputs * masks), conv(targets * masks)
        c, d = conv(inputs * (1 - masks)), conv(targets * (1 - masks))
        return jnp.mean(jnp.abs(a - b)) + jnp.mean((c - d) ** 2)
    l1 = jnp.mean(jnp.abs(inputs * masks - targets * masks))
    mse = jnp.mean((inputs * (1 - masks) - targets * (1 - masks)) ** 2)
    return l1 + mse


if __name__ == "__main__":
    key = jax.random.PRNGKey(0)
    k1, k2, k3 = jax.random.split(key, 3)
    B, C, H, W = 2, 3, 16, 16
    inputs = jax.random.normal(k1, (B, C, H, W), jnp.float32)
    targets = jax.random.normal(k2, (B, C, H, W), jnp.float32)
    masks_i8 = (jax.random.uniform(k3, (B, C, H, W)) > 0.5).astype(jnp.int8)
    masks = masks_i8.astype(jnp.float32)

    # smooth=False (default) branch
    mod = MseLossPallas(smooth=False, kernel_size=3, in_channels=C)
    loss = jax.block_until_ready(mod(inputs, targets, masks))
    ref = _reference_loss(inputs, targets, masks, False, mod.weight,
                          mod.padding)
    assert jnp.allclose(loss, ref, rtol=1e-4, atol=1e-5), (loss, ref)

    # Masks streamed in a narrow dtype (int8), cast to f32 in-kernel
    # (cuts mem-bound HBM traffic from 12 B/elem to 9 B/elem).
    loss_i8 = jax.block_until_ready(mod(inputs, targets, masks_i8))
    assert jnp.allclose(loss_i8, ref, rtol=1e-4, atol=1e-5), (loss_i8, ref)

    # smooth=True branch (fused channel-sum + box-filter + reduction kernel)
    mod_s = MseLossPallas(smooth=True, kernel_size=3, in_channels=C)
    loss_s = jax.block_until_ready(mod_s(inputs, targets, masks))
    ref_s = _reference_loss(inputs, targets, masks, True, mod_s.weight,
                            mod_s.padding)
    assert jnp.allclose(loss_s, ref_s, rtol=1e-4, atol=1e-5), (loss_s, ref_s)

    print("KERNEL_OK")
</pallas_src>

<mosaic_0001>
module attributes {stable_mosaic.version = 11 : i64} {
  func.func @_masked_loss_kernel(%arg0: i32, %arg1: memref<12x128xf32, #tpu.memory_space<vmem>>, %arg2: memref<12x128xf32, #tpu.memory_space<vmem>>, %arg3: memref<12x128xf32, #tpu.memory_space<vmem>>, %arg4: memref<1x1x128xf32, #tpu.memory_space<vmem>>, %arg5: memref<1x1x128xf32, #tpu.memory_space<vmem>>) attributes {dimension_semantics = [#tpu.dimension_semantics<parallel>], iteration_bounds = array<i64: 1>, scalar_prefetch = 0 : i64, scratch_operands = 0 : i64, tpu.core_type = #tpu.core_type<tc>, window_params = [{transform_indices = @transform_0, window_bounds = array<i64: 12, 128>}, {transform_indices = @transform_1, window_bounds = array<i64: 12, 128>}, {transform_indices = @transform_2, window_bounds = array<i64: 12, 128>}, {transform_indices = @transform_3, window_bounds = array<i64: 1, 1, 128>}, {transform_indices = @transform_4, window_bounds = array<i64: 1, 1, 128>}]} {
    %c0 = arith.constant 0 : index
    %c0_0 = arith.constant 0 : index
    %0 = vector.load %arg1[%c0, %c0_0] : memref<12x128xf32, #tpu.memory_space<vmem>>, vector<12x128xf32>
    %c0_1 = arith.constant 0 : index
    %c0_2 = arith.constant 0 : index
    %1 = vector.load %arg2[%c0_1, %c0_2] : memref<12x128xf32, #tpu.memory_space<vmem>>, vector<12x128xf32>
    %c0_3 = arith.constant 0 : index
    %c0_4 = arith.constant 0 : index
    %2 = vector.load %arg3[%c0_3, %c0_4] : memref<12x128xf32, #tpu.memory_space<vmem>>, vector<12x128xf32>
    %3 = arith.subf %0, %1 : vector<12x128xf32>
    %4 = arith.mulf %3, %2 : vector<12x128xf32>
    %5 = arith.subf %3, %4 : vector<12x128xf32>
    %6 = math.absf %4 : vector<12x128xf32>
    %7 = arith.mulf %5, %5 : vector<12x128xf32>
    %cst = arith.constant dense<0.000000e+00> : vector<128xf32>
    %8 = vector.multi_reduction <add>, %6, %cst [0] : vector<12x128xf32> to vector<128xf32>
    %9 = vector.shape_cast %8 : vector<128xf32> to vector<1x128xf32>
    %c0_5 = arith.constant 0 : index
    %c0_6 = arith.constant 0 : index
    %c0_7 = arith.constant 0 : index
    %10 = vector.load %arg4[%c0_5, %c0_6, %c0_7] : memref<1x1x128xf32, #tpu.memory_space<vmem>>, vector<1x1x128xf32>
    %11 = vector.shape_cast %10 : vector<1x1x128xf32> to vector<1x128xf32>
    %12 = vector.shape_cast %9 : vector<1x128xf32> to vector<1x1x128xf32>
    tpu.vector_store %arg4[%c0_5, %c0_6, %c0_7], %12 {strides = array<i32>} : memref<1x1x128xf32, #tpu.memory_space<vmem>>, vector<1x1x128xf32>,
    %cst_8 = arith.constant dense<0.000000e+00> : vector<128xf32>
    %13 = vector.multi_reduction <add>, %7, %cst_8 [0] : vector<12x128xf32> to vector<128xf32>
    %14 = vector.shape_cast %13 : vector<128xf32> to vector<1x128xf32>
    %c0_9 = arith.constant 0 : index
    %c0_10 = arith.constant 0 : index
    %c0_11 = arith.constant 0 : index
    %15 = vector.load %arg5[%c0_9, %c0_10, %c0_11] : memref<1x1x128xf32, #tpu.memory_space<vmem>>, vector<1x1x128xf32>
    %16 = vector.shape_cast %15 : vector<1x1x128xf32> to vector<1x128xf32>
    %17 = vector.shape_cast %14 : vector<1x128xf32> to vector<1x1x128xf32>
    tpu.vector_store %arg5[%c0_9, %c0_10, %c0_11], %17 {strides = array<i32>} : memref<1x1x128xf32, #tpu.memory_space<vmem>>, vector<1x1x128xf32>,
    return
  }
  func.func @transform_0(%arg0: i32) -> (i32, i32) {
    %c0_i32 = arith.constant 0 : i32
    %c0_i32_0 = arith.constant 0 : i32
    return %arg0, %c0_i32 : i32, i32
  }
  func.func @transform_1(%arg0: i32) -> (i32, i32) {
    %c0_i32 = arith.constant 0 : i32
    %c0_i32_0 = arith.constant 0 : i32
    return %arg0, %c0_i32 : i32, i32
  }
  func.func @transform_2(%arg0: i32) -> (i32, i32) {
    %c0_i32 = arith.constant 0 : i32
    %c0_i32_0 = arith.constant 0 : i32
    return %arg0, %c0_i32 : i32, i32
  }
  func.func @transform_3(%arg0: i32) -> (i32, i32, i32) {
    %c0_i32 = arith.constant 0 : i32
    %c0_i32_0 = arith.constant 0 : i32
    %c0_i32_1 = arith.constant 0 : i32
    return %arg0, %c0_i32, %c0_i32_0 : i32, i32, i32
  }
  func.func @transform_4(%arg0: i32) -> (i32, i32, i32) {
    %c0_i32 = arith.constant 0 : i32
    %c0_i32_0 = arith.constant 0 : i32
    %c0_i32_1 = arith.constant 0 : i32
    return %arg0, %c0_i32, %c0_i32_0 : i32, i32, i32
  }
}

</mosaic_0001>

<bundles_post_ra>
// kernel: tpu_custom_call.1
= control target key start
LH: loop header
LB: loop body
LE: loop exit
PB: predicated region body
PF: predicated region fallthrough
CT: control target
= control target key end

     0   :  { %10 = vsyncpa [#allocation3], 0  ;;  %s286_s0 = inlined_call_operand.hbm [shape: f32[12,128], index: 0, kind: input, shape index: {}]   ;;  %s287_s1 = inlined_call_operand.hbm [shape: f32[12,128], index: 1, kind: input, shape index: {}]   ;;  %s288_s2 = inlined_call_operand.hbm [shape: f32[12,128], index: 2, kind: input, shape index: {}]   ;;  %s289_s3 = inlined_call_operand.hbm [shape: f32[1,1,128], index: 3, kind: output, shape index: {0}]   ;;  %s290_s4 = inlined_call_operand.hbm [shape: f32[1,1,128], index: 4, kind: output, shape index: {1}]  }
   0x1   :  { %11 = vsyncpa [#allocation6], 0 }
   0x2   :  { %12 = vsyncpa [#allocation4], 0 }
   0x3   :  { %13 = vsyncpa [#allocation10], 0  ;;  %s239_s15 = smov [#allocation5]   ;;  %s240_s17 = smov [#allocation2]  }
   0x4   :  { %s31_s16 = sshll.u32 %s239_s15, 4  ;;  %s19_s18 = sshll.u32 %s240_s17, 4  ;;  %s32_s16 = int_to_ptr.vmem [resolvable:$true] %s31_s16  ;;  %s20_s18 = int_to_ptr.vmem [resolvable:$true] %s19_s18 }
   0x5   :  { %s139_s19 = scalar_lea.vmem %s32_s16, 256  ;;  %p144_p1 = scmp.lt.s32.totalorder %s32_s16, %s32_s16 }
   0x6   :  { %p140_p0 = scmp.ne.s32.totalorder %s32_s16, %s139_s19  ;;  %p145_p2 = scmp.lt.s32.totalorder %s139_s19, %s139_s19 }
   0x8   :  { %p146_p3 = por %p145_p2, %p144_p1 }
   0xa   :  { %p147_p4 = pnand %p146_p3, %p140_p0 }
   0xc   :  { %150 = shalt.err (!%p147_p4)
}
   0xd   :  { %s241_s20 = smov 128   ;;  %s242_s21 = smov 8  }
   0xe   :  { %37 = dma.hbm_to_vmem [thread:$0]  %s287_s1, 256, %s32_s16, [#allocation6], %s241_s20, %s241_s20, %s242_s21  }
   0xf   :  { %s159_s24 = scalar_lea.vmem %s20_s18, 256  ;;  %p164_p6 = scmp.lt.s32.totalorder %s20_s18, %s20_s18 }
  0x10   :  { %p160_p5 = scmp.ne.s32.totalorder %s20_s18, %s159_s24  ;;  %p165_p7 = scmp.lt.s32.totalorder %s159_s24, %s159_s24 }
  0x12   :  { %p166_p8 = por %p165_p7, %p164_p6 }
  0x14   :  { %p167_p9 = pnand %p166_p8, %p160_p5 }
  0x16   :  { %170 = shalt.err (!%p167_p9)
}
  0x17   :  { %25 = dma.hbm_to_vmem [thread:$0]  %s286_s0, 256, %s20_s18, [#allocation3], %s241_s20, %s241_s20, %s242_s21  }
  0x18   :  { %s243_s27 = smov [#allocation7]  }
  0x19   :  { %s43_s28 = sshll.u32 %s243_s27, 4  ;;  %s44_s28 = int_to_ptr.vmem [resolvable:$true] %s43_s28 }
  0x1a   :  { %s179_s29 = scalar_lea.vmem %s44_s28, 256  ;;  %p184_p11 = scmp.lt.s32.totalorder %s44_s28, %s44_s28 }
  0x1b   :  { %p180_p10 = scmp.ne.s32.totalorder %s44_s28, %s179_s29  ;;  %p185_p12 = scmp.lt.s32.totalorder %s179_s29, %s179_s29 }
  0x1d   :  { %p186_p13 = por %p185_p12, %p184_p11 }
  0x1f   :  { %p187_p0 = pnand %p186_p13, %p180_p10 }
  0x21   :  { %190 = shalt.err (!%p187_p0)
}
  0x22   :  { %49 = dma.hbm_to_vmem [thread:$0]  %s288_s2, 256, %s44_s28, [#allocation6], %s241_s20, %s241_s20, %s242_s21  }
  0x23   :  { %231 = dma.done.wait [#allocation3], 256  }
  0x24   :  { %232 = vsyncadd [#allocation3], 4294967040 }
  0x25   :  { %233 = dma.done.wait [#allocation6], 512  }
  0x26   :  { %234 = vsyncadd [#allocation6], 4294966784  ;;  %v59_v0 = vld [vmem:[#allocation2] sm:$0xff]  ;;  %v60_v1 = vld [vmem:[#allocation2 + $0x8] sm:$0xf]  ;;  %vm75_vm0 = vcmask 1043456  }
  0x27   :  { %v61_v2 = vld [vmem:[#allocation5] sm:$0xff]  ;;  %v62_v3 = vld [vmem:[#allocation5 + $0x8] sm:$0xf]  ;;  %v63_v4 = vld [vmem:[#allocation7] sm:$0xff]  ;;  %s244_s0 = smov [#allocation8]   ;;  %s245_s5 = smov [#allocation9]  }
  0x28   :  { %v64_v5 = vld [vmem:[#allocation7 + $0x8] sm:$0xf]  ;;  %v65_v6 = vsub.f32 %v59_v0, %v61_v2  ;;  %v66_v7 = vsub.f32 %v60_v1, %v62_v3  ;;  %s100_s2 = sshll.u32 %s244_s0, 4  ;;  %s110_s6 = sshll.u32 %s245_s5, 4  ;;  %s101_s2 = int_to_ptr.vmem [resolvable:$true] %s100_s2  ;;  %s111_s6 = int_to_ptr.vmem [resolvable:$true] %s110_s6 }
  0x29   :  { %s191_s7 = scalar_lea.vmem %s101_s2, 16  ;;  %s195_s8 = scalar_lea.vmem %s101_s2, 32 }
  0x2a   :  { %v67_v8 = vmul.f32 %v65_v6, %v63_v4  ;;  %v68_v9 = vmul.f32 %v66_v7, %v64_v5  ;;  %p192_p1 = scmp.ne.s32.totalorder %s101_s2, %s191_s7  ;;  %p196_p2 = scmp.lt.s32.totalorder %s101_s2, %s101_s2 }
  0x2b   :  { %p197_p3 = scmp.lt.s32.totalorder %s195_s8, %s191_s7 }
  0x2c   :  { %v71_v10 = vand.u32 2147483647, %v67_v8  ;;  %v69_v11 = vsub.f32 %v65_v6, %v67_v8  ;;  %v72_v12 = vand.u32 2147483647, %v68_v9  ;;  %v70_v13 = vsub.f32 %v66_v7, %v68_v9 }
  0x2d   :  { %p198_p4 = por %p197_p3, %p196_p2 }
  0x2e   :  { %v73_v14 = vmul.f32 %v69_v11, %v69_v11  ;;  %v76_v15 = vsel %vm75_vm0, %v72_v12, 0.0  ;;  %v74_v16 = vmul.f32 %v70_v13, %v70_v13 }
  0x2f   :  { %v77_v17 = vadd.f32 %v76_v15, %v71_v10  ;;  %p199_p5 = pnand %p198_p4, %p192_p1 }
  0x30   :  { %v85_v18 = vsel %vm75_vm0, %v74_v16, 0.0 }
  0x31   :  { %v78_v19 = vrot.slane %v77_v17, 4  ;;  %v86_v20 = vadd.f32 %v85_v18, %v73_v14 }
  0x33   :  { %v79_v21 = vadd.f32 %v78_v19, %v77_v17  ;;  %v87_v22 = vrot.slane %v86_v20, 4 }
  0x35   :  { %v80_v23 = vrot.slane %v79_v21, 2  ;;  %v88_v24 = vadd.f32 %v87_v22, %v86_v20 }
  0x37   :  { %v81_v25 = vadd.f32 %v80_v23, %v79_v21  ;;  %v89_v26 = vrot.slane %v88_v24, 2 }
  0x39   :  { %v82_v27 = vrot.slane %v81_v25, 1  ;;  %v90_v28 = vadd.f32 %v89_v26, %v88_v24 }
  0x3b   :  { %v83_v29 = vadd.f32 %v82_v27, %v81_v25  ;;  %v91_v30 = vrot.slane %v90_v28, 1 }
  0x3d   :  { %84 = vst [vmem:[#allocation8] sm:$0x1] %v83_v29  ;;  %v92_v31 = vadd.f32 %v91_v30, %v90_v28 }
  0x3e   :  { %202 = shalt.err (!%p199_p5)
}
  0x3f   :  { %103 = dma.vmem_to_hbm [thread:$0]  %s101_s2, 16, %s289_s3, [#allocation4]   ;;  %93 = vst [vmem:[#allocation9] sm:$0x1] %v92_v31 }
  0x40   :  { %s211_s11 = scalar_lea.vmem %s111_s6, 16  ;;  %s215_s12 = scalar_lea.vmem %s111_s6, 32 }
  0x41   :  { %p212_p6 = scmp.ne.s32.totalorder %s111_s6, %s211_s11  ;;  %p216_p7 = scmp.lt.s32.totalorder %s111_s6, %s111_s6 }
  0x42   :  { %p217_p8 = scmp.lt.s32.totalorder %s215_s12, %s211_s11 }
  0x44   :  { %p218_p9 = por %p217_p8, %p216_p7 }
  0x46   :  { %p219_p10 = pnand %p218_p9, %p212_p6 }
  0x48   :  { %222 = shalt.err (!%p219_p10)
}
  0x49   :  { %113 = dma.vmem_to_hbm [thread:$0]  %s111_s6, 16, %s290_s4, [#allocation10]  }
  0x4a   :  { %235 = dma.done.wait [#allocation4], 16  }
  0x4b   :  { %236 = vsyncadd [#allocation4], 4294967280 }
  0x4c   :  { %237 = dma.done.wait [#allocation10], 16  }
  0x4d   :  { %238 = vsyncadd [#allocation10], 4294967280 }
  0x4e   :  { %120 = vsyncpa [#allocation3], 1 }
  0x4f   :  { %121 = vsyncpa [#allocation6], 1 }
  0x50   :  { %122 = vsyncpa [#allocation4], 1 }
  0x51   :  { %123 = vsyncpa [#allocation10], 1 }

</bundles_post_ra>
